<compile_context>
chip_gen: v7x
topology: tpu7x:2x2x1
jax: 0.10.0
libtpu: 0.0.40
codegen_flags: <defaults>
</compile_context>

<pallas_src>
import functools

import numpy as np
import jax
import jax.numpy as jnp
from jax.experimental import pallas as pl
from jax.experimental.pallas import tpu as pltpu

EPSILON = 1e-06
LANE = 128          # feature tile width (vreg lane count)
AUX_SUBLANE = 8     # aux is always f32 -> (8, 128) min tile


def _round_up(a, b):
    return (a + b - 1) // b * b


def _sublane(dtype):
    # Minimum second-to-last tile dim for this dtype: 8 (f32), 16 (bf16), 32 (i8).
    bits = np.dtype(dtype).itemsize * 8
    return max(8, 256 // bits)


def _clamp_kernel(tile_tbl_ref, x_ref, aux_ref, o_ref, *, clamp_type):
    """Clamp-or-passthrough on one (TB, LANE) tile.

    tile_tbl_ref: scalar-prefetch SMEM ref (consumed only by the index_maps).
    aux_ref:      (8, LANE) f32 block; row 0 = per-column upper bound,
                  row 1 = bounded-column mask (rows 2..7 are padding).
    """
    del tile_tbl_ref  # only used by the BlockSpec index_maps
    x = x_ref[...].astype(jnp.float32)        # (TB, LANE)
    upper = aux_ref[0:1, :]                   # (1, LANE), broadcasts over batch
    mask = aux_ref[1:2, :]                    # (1, LANE)

    if clamp_type == "logsigmoid":
        # stable logsigmoid(x) = min(x, 0) - log1p(exp(-|x|))
        val = jnp.minimum(x, 0.0) - jnp.log1p(jnp.exp(-jnp.abs(x)))
        clamped = upper + val - EPSILON
    elif clamp_type == "relu":
        clamped = upper - jnp.maximum(x, 0.0) - EPSILON   # EUP-free path
    elif clamp_type == "softplus":
        # stable softplus(x) = max(x, 0) + log1p(exp(-|x|))
        val = jnp.maximum(x, 0.0) + jnp.log1p(jnp.exp(-jnp.abs(x)))
        clamped = upper - val - EPSILON
    else:
        raise ValueError("Unsupported clamp_type.")

    o_ref[...] = jnp.where(mask > 0.5, clamped, x).astype(o_ref.dtype)


def make_log_scale_output_clamp(bounded_col_idx, upper_bounds, num_features,
                                clamp_type="logsigmoid", batch_tile=8192,
                                donate_input=True):
    """Equivalent of LogScaleOutputClamp.__init__ + forward for 2-D
    [batch, num_features] inputs.

    NOTE: the returned function donates its input (the output reuses x's HBM
    buffer via input_output_aliases, so untouched feature tiles cost no HBM
    traffic).  Pass a copy if the caller still needs x afterwards, or set
    donate_input=False (which re-introduces one defensive copy of x).
    """
    if clamp_type not in ("logsigmoid", "relu", "softplus"):
        raise ValueError("Unsupported clamp_type.")

    bounded_col_idx = np.asarray(bounded_col_idx, dtype=np.int64).reshape(-1)
    if bounded_col_idx.size == 0:
        return jax.jit(lambda x: x)

    F = int(num_features)
    if bounded_col_idx.min() < 0 or bounded_col_idx.max() >= F:
        raise ValueError("bounded_col_idx out of range.")
    FP = _round_up(F, LANE)
    upper_bounds = np.broadcast_to(
        np.asarray(upper_bounds, dtype=np.float32), bounded_col_idx.shape)

    # Module-buffer-style precompute (done once, like register_buffer):
    # aux row 0 = upper bound per column, row 1 = bounded-column mask.
    aux_np = np.zeros((AUX_SUBLANE, FP), dtype=np.float32)
    aux_np[0, bounded_col_idx] = upper_bounds
    aux_np[1, bounded_col_idx] = 1.0
    aux = jnp.asarray(aux_np)

    # 128-lane feature tiles that contain at least one bounded column.
    touched = np.unique(bounded_col_idx // LANE).astype(np.int32)
    tile_tbl = jnp.asarray(touched)
    n_touched = int(touched.size)
    # TODO(synk): coalesce adjacent touched tiles into wider (TB, k*128) runs
    # to cut per-step / DMA-descriptor overhead when bounded columns cluster.

    kernel = functools.partial(_clamp_kernel, clamp_type=clamp_type)

    def forward(x):
        if x.ndim != 2 or x.shape[1] != F:
            raise ValueError("expected x of shape [batch, num_features]")
        B = x.shape[0]
        sub = _sublane(x.dtype)
        B8 = _round_up(B, sub)
        # Even-split batch tiling: at most (sub - 1) rows of slack per tile.
        TB = _round_up(pl.cdiv(B8, pl.cdiv(B8, batch_tile)), sub)
        nb = pl.cdiv(B, TB)
        # Guarantee >= 2 parallel grid steps when possible (v7x has 2 TCs).
        if nb * n_touched < 2 and B8 >= 2 * sub:
            TB = _round_up(pl.cdiv(B8, 2), sub)
            nb = pl.cdiv(B, TB)

        return pl.pallas_call(
            kernel,
            out_shape=jax.ShapeDtypeStruct((B, F), x.dtype),
            grid_spec=pltpu.PrefetchScalarGridSpec(
                num_scalar_prefetch=1,
                # Feature-tile axis outermost so the aux block index stays
                # constant over the inner batch axis (redundant DMA skipped).
                grid=(n_touched, nb),
                in_specs=[
                    pl.BlockSpec((TB, LANE), lambda j, i, tbl: (i, tbl[j])),
                    pl.BlockSpec((AUX_SUBLANE, LANE),
                                 lambda j, i, tbl: (0, tbl[j])),
                ],
                out_specs=pl.BlockSpec((TB, LANE),
                                       lambda j, i, tbl: (i, tbl[j])),
            ),
            # x (flat input index 1: [tile_tbl, x, aux]) aliases output 0:
            # feature tiles with no bounded columns are never streamed and
            # keep the original x values.
            input_output_aliases={1: 0},
            compiler_params=pltpu.CompilerParams(
                dimension_semantics=("parallel", "parallel"),
                vmem_limit_bytes=32 * 1024 * 1024,
            ),
        )(tile_tbl, x, aux)

    if donate_input:
        return jax.jit(forward, donate_argnums=0)
    return jax.jit(forward)


def _reference(x, bounded_col_idx, upper_bounds, clamp_type):
    idx = jnp.asarray(np.asarray(bounded_col_idx, dtype=np.int64),
                      dtype=jnp.int32)
    xf = x.astype(jnp.float32)
    ub = jnp.broadcast_to(jnp.asarray(upper_bounds, dtype=jnp.float32),
                          idx.shape)
    raw = xf[:, idx]
    if clamp_type == "logsigmoid":
        clamped = ub + jax.nn.log_sigmoid(raw) - EPSILON
    elif clamp_type == "relu":
        clamped = ub - jax.nn.relu(raw) - EPSILON
    else:
        clamped = ub - jax.nn.softplus(raw) - EPSILON
    return x.at[:, idx].set(clamped.astype(x.dtype))


if __name__ == "__main__":
    key = jax.random.PRNGKey(0)
    k1, k2, k3 = jax.random.split(key, 3)
    ok = True

    # Case 1: tiny f32 input, single (partial) 128-lane feature tile.
    x1 = jax.random.normal(k1, (8, 32), dtype=jnp.float32) * 3.0
    idx1 = np.array([1, 5, 7, 20], dtype=np.int64)
    ub1 = np.array([0.5, 1.0, -2.0, 3.0], dtype=np.float32)

    # Case 2: several touched tiles, a bounded column inside the partial tail
    # tile (col 990, F=1000), partial batch tile (B=100), untouched middle
    # tiles preserved through the output alias; scalar upper bound broadcast.
    x2 = jax.random.normal(k2, (100, 1000), dtype=jnp.float32) * 3.0
    idx2 = np.array([3, 200, 777, 990], dtype=np.int64)
    ub2 = 1.5

    # Case 3: bf16 input (dtype-aware sublane alignment), full tiles.
    x3 = (jax.random.normal(k3, (32, 256), dtype=jnp.float32) * 3.0
          ).astype(jnp.bfloat16)
    idx3 = np.array([5, 130], dtype=np.int64)
    ub3 = np.array([0.25, 2.0], dtype=np.float32)

    cases = ((x1, idx1, ub1, 1e-5), (x2, idx2, ub2, 1e-5),
             (x3, idx3, ub3, 2e-2))

    for (x, idx, ub, tol) in cases:
        for clamp_type in ("logsigmoid", "relu", "softplus"):
            fwd = make_log_scale_output_clamp(idx, ub, x.shape[1],
                                              clamp_type=clamp_type)
            ref = _reference(x, idx, ub, clamp_type)
            # The wrapper donates its input; pass a copy so x stays usable.
            out = jax.block_until_ready(fwd(jnp.array(x)))
            if not jnp.allclose(out.astype(jnp.float32),
                                ref.astype(jnp.float32),
                                atol=tol, rtol=tol):
                ok = False

    if ok:
        print("KERNEL_OK")
</pallas_src>

<mosaic_0001>
module attributes {stable_mosaic.version = 11 : i64} {
  func.func @_clamp_kernel(%arg0: i32, %arg1: i32, %arg2: memref<1xi32, #tpu.memory_space<smem>>, %arg3: memref<8x128xf32, #tpu.memory_space<vmem>>, %arg4: memref<8x128xf32, #tpu.memory_space<vmem>>, %arg5: memref<8x128xf32, #tpu.memory_space<vmem>>) attributes {dimension_semantics = [#tpu.dimension_semantics<parallel>, #tpu.dimension_semantics<parallel>], iteration_bounds = array<i64: 1, 1>, scalar_prefetch = 1 : i64, scratch_operands = 0 : i64, tpu.core_type = #tpu.core_type<tc>, window_params = [{transform_indices = @transform_0, window_bounds = array<i64: 8, 128>}, {transform_indices = @transform_1, window_bounds = array<i64: 8, 128>}, {transform_indices = @transform_2, window_bounds = array<i64: 8, 128>}]} {
    %c0 = arith.constant 0 : index
    %c0_0 = arith.constant 0 : index
    %0 = vector.load %arg3[%c0, %c0_0] : memref<8x128xf32, #tpu.memory_space<vmem>>, vector<8x128xf32>
    %c0_1 = arith.constant 0 : index
    %c0_2 = arith.constant 0 : index
    %1 = vector.load %arg4[%c0_1, %c0_2] : memref<8x128xf32, #tpu.memory_space<vmem>>, vector<1x128xf32>
    %c1 = arith.constant 1 : index
    %c0_3 = arith.constant 0 : index
    %2 = vector.load %arg4[%c1, %c0_3] : memref<8x128xf32, #tpu.memory_space<vmem>>, vector<1x128xf32>
    %cst = arith.constant 0.000000e+00 : f32
    %3 = vector.broadcast %cst : f32 to vector<8x128xf32>
    %4 = arith.minimumf %0, %3 : vector<8x128xf32>
    %5 = math.absf %0 : vector<8x128xf32>
    %cst_4 = arith.constant 0.000000e+00 : f32
    %6 = vector.broadcast %cst_4 : f32 to vector<8x128xf32>
    %7 = arith.subf %6, %5 : vector<8x128xf32>
    %8 = math.exp %7 : vector<8x128xf32>
    %9 = math.log1p %8 : vector<8x128xf32>
    %10 = arith.subf %4, %9 : vector<8x128xf32>
    %11 = vector.broadcast %1 : vector<1x128xf32> to vector<8x128xf32>
    %12 = arith.addf %11, %10 : vector<8x128xf32>
    %cst_5 = arith.constant 9.99999997E-7 : f32
    %13 = vector.broadcast %cst_5 : f32 to vector<8x128xf32>
    %14 = arith.subf %12, %13 : vector<8x128xf32>
    %cst_6 = arith.constant 5.000000e-01 : f32
    %15 = vector.broadcast %cst_6 : f32 to vector<1x128xf32>
    %16 = arith.cmpf ogt, %2, %15 : vector<1x128xf32>
    %17 = vector.shape_cast %16 : vector<1x128xi1> to vector<1x128xi1>
    %18 = vector.broadcast %17 : vector<1x128xi1> to vector<8x128xi1>
    %19 = arith.select %18, %14, %0 : vector<8x128xi1>, vector<8x128xf32>
    %c0_7 = arith.constant 0 : index
    %c0_8 = arith.constant 0 : index
    %20 = vector.load %arg5[%c0_7, %c0_8] : memref<8x128xf32, #tpu.memory_space<vmem>>, vector<8x128xf32>
    tpu.vector_store %arg5[%c0_7, %c0_8], %19 {strides = array<i32>} : memref<8x128xf32, #tpu.memory_space<vmem>>, vector<8x128xf32>,
    return
  }
  func.func @transform_0(%arg0: i32, %arg1: i32, %arg2: memref<1xi32, #tpu.memory_space<smem>>) -> (i32, i32) {
    %0 = arith.index_cast %arg0 : i32 to index
    %1 = memref.load %arg2[%0] : memref<1xi32, #tpu.memory_space<smem>>
    %c0_i32 = arith.constant 0 : i32
    return %arg1, %1 : i32, i32
  }
  func.func @transform_1(%arg0: i32, %arg1: i32, %arg2: memref<1xi32, #tpu.memory_space<smem>>) -> (i32, i32) {
    %0 = arith.index_cast %arg0 : i32 to index
    %1 = memref.load %arg2[%0] : memref<1xi32, #tpu.memory_space<smem>>
    %c0_i32 = arith.constant 0 : i32
    %c0_i32_0 = arith.constant 0 : i32
    return %c0_i32, %1 : i32, i32
  }
  func.func @transform_2(%arg0: i32, %arg1: i32, %arg2: memref<1xi32, #tpu.memory_space<smem>>) -> (i32, i32) {
    %0 = arith.index_cast %arg0 : i32 to index
    %1 = memref.load %arg2[%0] : memref<1xi32, #tpu.memory_space<smem>>
    %c0_i32 = arith.constant 0 : i32
    return %arg1, %1 : i32, i32
  }
}

</mosaic_0001>

<bundles_post_ra>
// kernel: forward.1
= control target key start
LH: loop header
LB: loop body
LE: loop exit
PB: predicated region body
PF: predicated region fallthrough
CT: control target
= control target key end

     0   :  { %9 = vsyncpa [#allocation5], 0  ;;  %s255_s0 = inlined_call_operand.<no memory space> [shape: s32[1], index: 0, kind: input, shape index: {}]   ;;  %s256_s1 = inlined_call_operand.hbm [shape: f32[8,32], index: 1, kind: input, shape index: {}, may-alias: {1,3}]   ;;  %s257_s2 = inlined_call_operand.hbm [shape: f32[8,128], index: 2, kind: input, shape index: {}]   ;;  %s258_s3 = inlined_call_operand.hbm [shape: f32[8,32], index: 3, kind: output, shape index: {}, may-alias: {1,3}]  }
   0x1   :  { %10 = vsyncpa [#allocation8], 0 }
   0x2   :  { %11 = vsyncpa [#allocation6], 0  ;;  %s223_s14 = sshll.u32 %s255_s0, 7  ;;  %s196_s18 = smov [#allocation4]  }
   0x3   :  { %s19_s17 = scalar_lea.hbm %s256_s1, %s223_s14  ;;  %s21_s19 = sshll.u32 %s196_s18, 4  ;;  %s22_s19 = int_to_ptr.vmem [resolvable:$true] %s21_s19 }
   0x4   :  { %s118_s20 = scalar_lea.hbm %s19_s17, 128  ;;  %s120_s23 = scalar_lea.hbm %s256_s1, 128 }
   0x5   :  { %p119_p0 = scmp.ne.s32.totalorder %s19_s17, %s118_s20  ;;  %p121_p1 = scmp.lt.u32.totalorder %s19_s17, %s256_s1 }
   0x6   :  { %p122_p2 = scmp.lt.u32.totalorder %s120_s23, %s118_s20  ;;  %p124_p4 = scmp.lt.u32.totalorder %s118_s20, %s19_s17 }
   0x8   :  { %p123_p3 = por %p122_p2, %p121_p1 }
   0xa   :  { %p125_p5 = por %p124_p4, %p123_p3 }
   0xc   :  { %p126_p6 = pnand %p125_p5, %p119_p0 }
   0xe   :  { %129 = shalt.err (!%p126_p6)
}
   0xf   :  { %s130_s0 = scalar_lea.vmem %s22_s19, 128  ;;  %p135_p8 = scmp.lt.s32.totalorder %s22_s19, %s22_s19 }
  0x10   :  { %p131_p7 = scmp.ne.s32.totalorder %s22_s19, %s130_s0  ;;  %p136_p9 = scmp.lt.s32.totalorder %s130_s0, %s130_s0 }
  0x12   :  { %p137_p10 = por %p136_p9, %p135_p8 }
  0x14   :  { %p138_p11 = pnand %p137_p10, %p131_p7 }
  0x16   :  { %141 = shalt.err (!%p138_p11)
}
  0x17   :  { %24 = dma.hbm_to_vmem [thread:$0]  %s19_s17, 128, %s22_s19, [#allocation5]  }
  0x18   :  { %s32_s28 = scalar_lea.hbm %s257_s2, %s223_s14  ;;  %s197_s1 = smov [#allocation7]  }
  0x19   :  { %s34_s29 = sshll.u32 %s197_s1, 4  ;;  %s142_s30 = scalar_lea.hbm %s32_s28, 128  ;;  %s35_s29 = int_to_ptr.vmem [resolvable:$true] %s34_s29 }
  0x1a   :  { %p143_p12 = scmp.ne.s32.totalorder %s32_s28, %s142_s30  ;;  %s144_s6 = scalar_lea.hbm %s257_s2, 128 }
  0x1b   :  { %p145_p13 = scmp.lt.u32.totalorder %s32_s28, %s257_s2  ;;  %p146_p0 = scmp.lt.u32.totalorder %s144_s6, %s142_s30 }
  0x1c   :  { %p148_p2 = scmp.lt.u32.totalorder %s142_s30, %s32_s28 }
  0x1d   :  { %p147_p1 = por %p146_p0, %p145_p13 }
  0x1f   :  { %p149_p3 = por %p148_p2, %p147_p1 }
  0x21   :  { %p150_p4 = pnand %p149_p3, %p143_p12 }
  0x23   :  { %153 = shalt.err (!%p150_p4)
}
  0x24   :  { %s154_s9 = scalar_lea.vmem %s35_s29, 128  ;;  %p159_p6 = scmp.lt.s32.totalorder %s35_s29, %s35_s29 }
  0x25   :  { %p155_p5 = scmp.ne.s32.totalorder %s35_s29, %s154_s9  ;;  %p160_p7 = scmp.lt.s32.totalorder %s154_s9, %s154_s9 }
  0x27   :  { %p161_p8 = por %p160_p7, %p159_p6 }
  0x29   :  { %p162_p9 = pnand %p161_p8, %p155_p5 }
  0x2b   :  { %165 = shalt.err (!%p162_p9)
}
  0x2c   :  { %37 = dma.hbm_to_vmem [thread:$0]  %s32_s28, 128, %s35_s29, [#allocation8]  }
  0x2d   :  { %190 = dma.done.wait [#allocation5], 128  }
  0x2e   :  { %191 = vsyncadd [#allocation5], 4294967168 }
  0x2f   :  { %192 = dma.done.wait [#allocation8], 128  }
  0x30   :  { %193 = vsyncadd [#allocation8], 4294967168  ;;  %v47_v0 = vld [vmem:[#allocation4] sm:$0xff]  ;;  %v73_v7 = vlaneseq  ;;  %v49_v8 = vld [vmem:[#allocation7 + $0x1] sm:$0x1]  ;;  %v198_v16 = vmov 0   ;;  %s87_s13 = scalar_lea.hbm %s258_s3, %s223_s14 }
  0x31   :  { %v51_v1 = vand.u32 2147483647, %v47_v0  ;;  %vm71_vm0 = vcmp.gt.f32.partialorder %v49_v8, 0.5  ;;  %v50_v15 = vmin.f32 %v47_v0, 0.0  ;;  %v107_v19 = vld [vmem:[#allocation7] ss:$0 sm:$0xff] }
  0x32   :  { %v74_v10 = vshrl.u32 %v73_v7, 7  ;;  %v72_v17 = vsel %vm71_vm0, 1, %v198_v16  ;;  %s199_s2 = smov [#allocation9]  }
  0x33   :  { %v52_v2 = vsub.f32 0.0, %v51_v1  ;;  %s89_s10 = sshll.u32 %s199_s2, 4  ;;  %s90_s10 = int_to_ptr.vmem [resolvable:$true] %s89_s10 }
  0x34   :  { %v75_v13 = vsub.s32 0, %v74_v10  ;;  %s166_s15 = scalar_lea.vmem %s90_s10, 128  ;;  %p171_p11 = scmp.lt.s32.totalorder %s90_s10, %s90_s10 }
  0x35   :  { %v53_v3 = vmul.f32 1.442695, %v52_v2  ;;  %p167_p10 = scmp.ne.s32.totalorder %s90_s10, %s166_s15  ;;  %p172_p12 = scmp.lt.s32.totalorder %s166_s15, %s166_s15 }
  0x36   :  { %v76_v21 = vrot.slane %v72_v17, %v75_v13 }
  0x37   :  { %114 = vpow2.f32 %v53_v3  ;;  %p173_p13 = por %p172_p12, %p171_p11 }
  0x38   :  { %vm77_vm2 = vcmp.eq.s32.totalorder %v76_v21, 1 }
  0x39   :  { %p174_p0 = pnand %p173_p13, %p167_p10 }
  0x41   :  { %v115_v4 = vpop.eup %114 }
  0x42   :  { %v55_v5 = vadd.f32 1.0, %v115_v4  ;;  %v58_v6 = vmul.f32 -0.5, %v115_v4  ;;  %v61_v11 = vand.u32 2147483647, %v115_v4 }
  0x44   :  { %116 = vlog2.f32 %v55_v5  ;;  %v59_v9 = vadd.f32 1.0, %v58_v6  ;;  %vm62_vm1 = vcmp.lt.f32.partialorder %v61_v11, 0.0004427343 }
  0x46   :  { %v60_v12 = vmul.f32 %v115_v4, %v59_v9 }
  0x4e   :  { %v117_v14 = vpop.eup %116 }
  0x4f   :  { %v57_v18 = vmul.f32 0.6931472, %v117_v14 }
  0x51   :  { %v63_v20 = vsel %vm62_vm1, %v60_v12, %v57_v18 }
  0x52   :  { %v64_v22 = vsub.f32 %v50_v15, %v63_v20 }
  0x54   :  { %v69_v23 = vadd.f32 %v107_v19, %v64_v22 }
  0x56   :  { %v108_v24 = vadd.f32 -1e-06, %v69_v23 }
  0x58   :  { %v78_v25 = vsel %vm77_vm2, %v108_v24, %v47_v0 }
  0x59   :  { %79 = vst [vmem:[#allocation9] sm:$0xff] %v78_v25 }
  0x5a   :  { %177 = shalt.err (!%p174_p0)
}
  0x5b   :  { %s178_s16 = scalar_lea.hbm %s87_s13, 128  ;;  %s180_s19 = scalar_lea.hbm %s258_s3, 128 }
  0x5c   :  { %p179_p1 = scmp.ne.s32.totalorder %s87_s13, %s178_s16  ;;  %p181_p2 = scmp.lt.u32.totalorder %s87_s13, %s258_s3 }
  0x5d   :  { %p182_p3 = scmp.lt.u32.totalorder %s180_s19, %s178_s16  ;;  %p184_p5 = scmp.lt.u32.totalorder %s178_s16, %s87_s13 }
  0x5f   :  { %p183_p4 = por %p182_p3, %p181_p2 }
  0x61   :  { %p185_p6 = por %p184_p5, %p183_p4 }
  0x63   :  { %p186_p7 = pnand %p185_p6, %p179_p1 }
  0x65   :  { %189 = shalt.err (!%p186_p7)
}
  0x66   :  { %92 = dma.vmem_to_hbm [thread:$0]  %s90_s10, 128, %s87_s13, [#allocation6]  }
  0x67   :  { %194 = dma.done.wait [#allocation6], 128  }
  0x68   :  { %195 = vsyncadd [#allocation6], 4294967168 }
  0x69   :  { %96 = vsyncpa [#allocation5], 1 }
  0x6a   :  { %97 = vsyncpa [#allocation8], 1 }
  0x6b   :  { %98 = vsyncpa [#allocation6], 1 }

</bundles_post_ra>
